<compile_context>
chip_gen: v7x
topology: tpu7x:2x2x1
jax: 0.10.0
libtpu: 0.0.40
codegen_flags: <defaults>
</compile_context>

<pallas_src>
import numpy as np
import jax
import jax.numpy as jnp
from jax.experimental import pallas as pl
from jax.experimental.pallas import tpu as pltpu


def _round_up(v, m):
    return ((v + m - 1) // m) * m


def _default_act_dtype(matmul_dtype):
    """bf16 activations only where the VPU/EUP is bf16-native (v6e/v7x)."""
    if np.dtype(matmul_dtype) == np.dtype(jnp.float32):
        return jnp.float32
    try:
        kind = jax.devices()[0].device_kind.lower()
    except Exception:
        return jnp.float32
    if "v6" in kind or "v7" in kind:
        return matmul_dtype
    return jnp.float32   # v5e has no bf16 VPU/EUP; keep tanh in f32


def _make_mlp_kernel(depth, in_dim, d_out, matmul_dtype, act_dtype):
    """Fused MLP kernel, transposed dataflow: activations are (features, tm)."""
    n_stack = depth - 1

    def kernel(x_ref, w0_ref, b0_ref, ws_ref, bs_ref, out_ref):
        x = x_ref[...]        # (in_dim, tm) f32, lane-dense batch
        w0t = w0_ref[...]     # (hpad, in_dim) f32, normalization folded in
        b0 = b0_ref[...]      # (hpad, 1) f32

        # Layer 0 on the VPU: in_dim is tiny (2 for Burgers), so a couple of
        # broadcast multiply-adds beat a K=2 MXU matmul.
        if in_dim <= 8:
            h = b0 + w0t[:, 0:1] * x[0:1, :]
            for j in range(1, in_dim):
                h = h + w0t[:, j:j + 1] * x[j:j + 1, :]
        else:
            h = jnp.dot(w0t, x, preferred_element_type=jnp.float32) + b0
        h = jnp.tanh(h.astype(act_dtype))            # layer 0 is a hidden layer

        # Hidden + output layers: (hpad, hpad) @ (hpad, tm) on the MXU,
        # f32 accumulation, bias add in f32, tanh in act_dtype.
        for i in range(n_stack):
            w = ws_ref[i]                            # (hpad, hpad), W^T, matmul_dtype
            b = bs_ref[i]                            # (hpad, 1) f32
            acc = jnp.dot(w, h.astype(matmul_dtype),
                          preferred_element_type=jnp.float32) + b
            if i < n_stack - 1:
                h = jnp.tanh(acc.astype(act_dtype))
            else:
                h = acc                              # no activation on output layer

        # Lane-dense (d_out, tm) store.
        out_ref[...] = h[:d_out, :].astype(out_ref.dtype)

    return kernel


def dnn_forward_pallas(x, params, lw_b, hg_b, tm=None,
                       matmul_dtype=jnp.bfloat16, act_dtype=None):
    """Forward pass of the DNN as a single fused Pallas kernel.

    x:      (N, in_dim) float32 collocation points
    params: list of (W (in, out), b (out,)) float32, one per linear layer
    lw_b / hg_b: per-input-dim lower / upper bounds (array or scalar)
    tm:     batch-tile columns per grid step (default heuristic, 128-aligned)
    matmul_dtype: operand dtype for the hidden/output MXU matmuls
            (default bf16; accumulation is always float32)
    act_dtype: dtype for tanh (default: bf16 on v6e/v7x, f32 elsewhere)
    """
    x = jnp.asarray(x, jnp.float32)
    N, in_dim = x.shape
    depth = len(params)
    assert depth >= 2, "DNN needs at least one hidden layer"
    widths = [in_dim] + [W.shape[1] for (W, _) in params]
    d_out = widths[-1]
    # Feature padding only to the sublane granularity (16 covers f32 and bf16).
    hpad = max(8, _round_up(max(widths[1:]), 16))

    if act_dtype is None:
        act_dtype = _default_act_dtype(matmul_dtype)

    # --- Fold the normalization 2*(x - lw)/(hg - lw) - 1 into layer 0. ---
    lw = jnp.broadcast_to(jnp.asarray(lw_b, jnp.float32), (in_dim,))
    hg = jnp.broadcast_to(jnp.asarray(hg_b, jnp.float32), (in_dim,))
    scale = 2.0 / (hg - lw)
    offset = -lw * scale - 1.0
    W0 = jnp.asarray(params[0][0], jnp.float32)      # (in_dim, widths[1])
    b0 = jnp.asarray(params[0][1], jnp.float32)      # (widths[1],)
    W0f = W0 * scale[:, None]                        # diag(scale) @ W0
    b0f = b0 + offset @ W0

    # Transposed layer-0 weights (hpad, in_dim) and bias (hpad, 1), f32.
    w0t = jnp.zeros((hpad, in_dim), jnp.float32).at[:widths[1], :].set(W0f.T)
    b0t = jnp.zeros((hpad, 1), jnp.float32).at[:widths[1], 0].set(b0f)

    # --- Remaining layers as a stacked W^T / bias pack. ---
    n_stack = depth - 1
    ws = jnp.zeros((n_stack, hpad, hpad), jnp.float32)
    bs = jnp.zeros((n_stack, hpad, 1), jnp.float32)
    for i in range(n_stack):
        W, b = params[i + 1]
        din, dout_i = W.shape
        ws = ws.at[i, :dout_i, :din].set(jnp.asarray(W, jnp.float32).T)
        bs = bs.at[i, :dout_i, 0].set(jnp.asarray(b, jnp.float32))
    ws = ws.astype(matmul_dtype)

    # --- Batch tiling: 128-lane aligned, >=2 grid steps when batch allows. ---
    if tm is None:
        tm = min(4096, _round_up(N, 256))
        if N > 128:   # keep both v7x TensorCores busy on small/medium batches
            tm = min(tm, _round_up((N + 1) // 2, 128))
    tm = max(128, _round_up(int(tm), 128))
    n_pad = _round_up(N, tm)

    x_t = x.T                                        # (in_dim, N), lane-dense
    if n_pad != N:
        x_in = jnp.zeros((in_dim, n_pad), jnp.float32).at[:, :N].set(x_t)
    else:
        x_in = x_t
    grid = (n_pad // tm,)

    out_t = pl.pallas_call(
        _make_mlp_kernel(depth, in_dim, d_out, matmul_dtype, act_dtype),
        out_shape=jax.ShapeDtypeStruct((d_out, n_pad), jnp.float32),
        grid_spec=pltpu.PrefetchScalarGridSpec(
            num_scalar_prefetch=0,
            grid=grid,
            in_specs=[
                pl.BlockSpec((in_dim, tm), lambda i: (0, i)),              # x^T
                pl.BlockSpec((hpad, in_dim), lambda i: (0, 0)),            # W0^T
                pl.BlockSpec((hpad, 1), lambda i: (0, 0)),                 # b0
                pl.BlockSpec((n_stack, hpad, hpad), lambda i: (0, 0, 0)),  # W^T stack
                pl.BlockSpec((n_stack, hpad, 1), lambda i: (0, 0, 0)),     # bias stack
            ],
            out_specs=pl.BlockSpec((d_out, tm), lambda i: (0, i)),
        ),
        compiler_params=pltpu.CompilerParams(
            dimension_semantics=("parallel",),
            # Explicit scoped-VMEM budget: v5e defaults to only 16 MiB; 32 MiB
            # is safe on every generation and covers tm up to 4096 with room.
            vmem_limit_bytes=32 * 1024 * 1024,
        ),
    )(x_in, w0t, b0t, ws, bs)

    return out_t[:, :N].T


def init_params(layers, key):
    """Xavier-uniform weights (stored as (in, out)), zero biases — matches
    nn.init.xavier_uniform_ / nn.init.zeros_ in the PyTorch module."""
    params = []
    for i in range(len(layers) - 1):
        fan_in, fan_out = layers[i], layers[i + 1]
        bound = (6.0 / (fan_in + fan_out)) ** 0.5
        key, sub = jax.random.split(key)
        W = jax.random.uniform(sub, (fan_in, fan_out), jnp.float32,
                               minval=-bound, maxval=bound)
        b = jnp.zeros((fan_out,), jnp.float32)
        params.append((W, b))
    return params


def dnn_forward_ref(x, params, lw_b, hg_b):
    """Plain-JAX reference (un-fused normalization, HIGHEST-precision dots)."""
    h = 2.0 * (x - lw_b) / (hg_b - lw_b) - 1.0
    for (W, b) in params[:-1]:
        h = jnp.tanh(jnp.dot(h, W, precision=jax.lax.Precision.HIGHEST) + b)
    W, b = params[-1]
    return jnp.dot(h, W, precision=jax.lax.Precision.HIGHEST) + b


if __name__ == "__main__":
    key = jax.random.PRNGKey(0)

    # Burgers PINN-style network: input (x, t), two hidden layers, scalar out.
    layers = [2, 32, 32, 1]
    lw_b = jnp.array([-1.0, 0.0], jnp.float32)   # lower bounds for (x, t)
    hg_b = jnp.array([1.0, 1.0], jnp.float32)    # upper bounds for (x, t)

    key, pkey, xkey = jax.random.split(key, 3)
    params = init_params(layers, pkey)

    N = 200  # small batch of collocation points
    x = jax.random.uniform(xkey, (N, 2), jnp.float32, minval=lw_b, maxval=hg_b)
    ref = dnn_forward_ref(x, params, lw_b, hg_b)

    # Exact f32 path, explicit single-step tile.
    out_f32 = jax.block_until_ready(
        dnn_forward_pallas(x, params, lw_b, hg_b, tm=256,
                           matmul_dtype=jnp.float32, act_dtype=jnp.float32))
    assert out_f32.shape == (N, 1), out_f32.shape
    assert jnp.allclose(out_f32, ref, atol=1e-4, rtol=1e-4)

    # Exact f32 path, default tile heuristic (two grid steps of 128 here).
    out_f32b = jax.block_until_ready(
        dnn_forward_pallas(x, params, lw_b, hg_b,
                           matmul_dtype=jnp.float32, act_dtype=jnp.float32))
    assert jnp.allclose(out_f32b, ref, atol=1e-4, rtol=1e-4)

    # Default fast path: bf16 MXU matmuls (f32 accumulation), bf16 tanh on
    # v6e/v7x and f32 tanh on v5e -- looser tolerance for bf16 operands.
    out_fast = jax.block_until_ready(dnn_forward_pallas(x, params, lw_b, hg_b))
    assert out_fast.shape == (N, 1), out_fast.shape
    assert jnp.allclose(out_fast, ref, atol=1e-1, rtol=1e-1)

    # Larger, non-multiple-of-128 batch: exercises batch padding + multi-step grid.
    key, xkey2 = jax.random.split(key)
    x2 = jax.random.uniform(xkey2, (1000, 2), jnp.float32, minval=lw_b, maxval=hg_b)
    ref2 = dnn_forward_ref(x2, params, lw_b, hg_b)
    out2 = jax.block_until_ready(
        dnn_forward_pallas(x2, params, lw_b, hg_b,
                           matmul_dtype=jnp.float32, act_dtype=jnp.float32))
    assert jnp.allclose(out2, ref2, atol=1e-4, rtol=1e-4)

    print("KERNEL_OK")
</pallas_src>

<mosaic_0001>
module attributes {stable_mosaic.version = 11 : i64} {
  func.func @kernel(%arg0: i32, %arg1: memref<2x256xf32, #tpu.memory_space<vmem>>, %arg2: memref<32x2xf32, #tpu.memory_space<vmem>>, %arg3: memref<32x1xf32, #tpu.memory_space<vmem>>, %arg4: memref<2x32x32xf32, #tpu.memory_space<vmem>>, %arg5: memref<2x32x1xf32, #tpu.memory_space<vmem>>, %arg6: memref<1x256xf32, #tpu.memory_space<vmem>>) attributes {dimension_semantics = [#tpu.dimension_semantics<parallel>], iteration_bounds = array<i64: 1>, scalar_prefetch = 0 : i64, scratch_operands = 0 : i64, tpu.core_type = #tpu.core_type<tc>, window_params = [{transform_indices = @transform_0, window_bounds = array<i64: 2, 256>}, {pipeline_mode = #tpu.pipeline_mode<synchronous>, transform_indices = @transform_1, window_bounds = array<i64: 32, 2>}, {pipeline_mode = #tpu.pipeline_mode<synchronous>, transform_indices = @transform_2, window_bounds = array<i64: 32, 1>}, {pipeline_mode = #tpu.pipeline_mode<synchronous>, transform_indices = @transform_3, window_bounds = array<i64: 2, 32, 32>}, {pipeline_mode = #tpu.pipeline_mode<synchronous>, transform_indices = @transform_4, window_bounds = array<i64: 2, 32, 1>}, {transform_indices = @transform_5, window_bounds = array<i64: 1, 256>}]} {
    %c0 = arith.constant 0 : index
    %c0_0 = arith.constant 0 : index
    %0 = vector.load %arg1[%c0, %c0_0] : memref<2x256xf32, #tpu.memory_space<vmem>>, vector<2x256xf32>
    %c0_1 = arith.constant 0 : index
    %c0_2 = arith.constant 0 : index
    %1 = vector.load %arg2[%c0_1, %c0_2] : memref<32x2xf32, #tpu.memory_space<vmem>>, vector<32x2xf32>
    %c0_3 = arith.constant 0 : index
    %c0_4 = arith.constant 0 : index
    %2 = vector.load %arg3[%c0_3, %c0_4] : memref<32x1xf32, #tpu.memory_space<vmem>>, vector<32x1xf32>
    %3 = vector.extract_strided_slice %1 {offsets = [0, 0], sizes = [32, 1], strides = [1, 1]} : vector<32x2xf32> to vector<32x1xf32>
    %4 = vector.extract_strided_slice %0 {offsets = [0, 0], sizes = [1, 256], strides = [1, 1]} : vector<2x256xf32> to vector<1x256xf32>
    %5 = vector.broadcast %3 : vector<32x1xf32> to vector<32x256xf32>
    %6 = vector.broadcast %4 : vector<1x256xf32> to vector<32x256xf32>
    %7 = arith.mulf %5, %6 : vector<32x256xf32>
    %8 = vector.broadcast %2 : vector<32x1xf32> to vector<32x256xf32>
    %9 = arith.addf %8, %7 : vector<32x256xf32>
    %10 = vector.extract_strided_slice %1 {offsets = [0, 1], sizes = [32, 1], strides = [1, 1]} : vector<32x2xf32> to vector<32x1xf32>
    %11 = vector.extract_strided_slice %0 {offsets = [1, 0], sizes = [1, 256], strides = [1, 1]} : vector<2x256xf32> to vector<1x256xf32>
    %12 = vector.broadcast %10 : vector<32x1xf32> to vector<32x256xf32>
    %13 = vector.broadcast %11 : vector<1x256xf32> to vector<32x256xf32>
    %14 = arith.mulf %12, %13 : vector<32x256xf32>
    %15 = arith.addf %9, %14 : vector<32x256xf32>
    %16 = math.tanh %15 : vector<32x256xf32>
    %c0_5 = arith.constant 0 : index
    %c0_6 = arith.constant 0 : index
    %c0_7 = arith.constant 0 : index
    %17 = vector.load %arg4[%c0_5, %c0_6, %c0_7] : memref<2x32x32xf32, #tpu.memory_space<vmem>>, vector<1x32x32xf32>
    %18 = vector.shape_cast %17 : vector<1x32x32xf32> to vector<32x32xf32>
    %c0_8 = arith.constant 0 : index
    %c0_9 = arith.constant 0 : index
    %c0_10 = arith.constant 0 : index
    %19 = vector.load %arg5[%c0_8, %c0_9, %c0_10] : memref<2x32x1xf32, #tpu.memory_space<vmem>>, vector<1x32x1xf32>
    %20 = vector.shape_cast %19 : vector<1x32x1xf32> to vector<32x1xf32>
    %cst = arith.constant dense<0.000000e+00> : vector<32x256xf32>
    %21 = tpu.matmul %18, %16, %cst {dimension_numbers = #tpu.dot_dimension_numbers<[1], [0], [0], [1], [0, 0, 1, 1], [], []>} : vector<32x32xf32>, vector<32x256xf32>, vector<32x256xf32> -> vector<32x256xf32>
    %22 = vector.broadcast %20 : vector<32x1xf32> to vector<32x256xf32>
    %23 = arith.addf %21, %22 : vector<32x256xf32>
    %24 = math.tanh %23 : vector<32x256xf32>
    %c1 = arith.constant 1 : index
    %c0_11 = arith.constant 0 : index
    %c0_12 = arith.constant 0 : index
    %25 = vector.load %arg4[%c1, %c0_11, %c0_12] : memref<2x32x32xf32, #tpu.memory_space<vmem>>, vector<1x32x32xf32>
    %26 = vector.shape_cast %25 : vector<1x32x32xf32> to vector<32x32xf32>
    %c1_13 = arith.constant 1 : index
    %c0_14 = arith.constant 0 : index
    %c0_15 = arith.constant 0 : index
    %27 = vector.load %arg5[%c1_13, %c0_14, %c0_15] : memref<2x32x1xf32, #tpu.memory_space<vmem>>, vector<1x32x1xf32>
    %28 = vector.shape_cast %27 : vector<1x32x1xf32> to vector<32x1xf32>
    %cst_16 = arith.constant dense<0.000000e+00> : vector<32x256xf32>
    %29 = tpu.matmul %26, %24, %cst_16 {dimension_numbers = #tpu.dot_dimension_numbers<[1], [0], [0], [1], [0, 0, 1, 1], [], []>} : vector<32x32xf32>, vector<32x256xf32>, vector<32x256xf32> -> vector<32x256xf32>
    %30 = vector.broadcast %28 : vector<32x1xf32> to vector<32x256xf32>
    %31 = arith.addf %29, %30 : vector<32x256xf32>
    %32 = vector.extract_strided_slice %31 {offsets = [0, 0], sizes = [1, 256], strides = [1, 1]} : vector<32x256xf32> to vector<1x256xf32>
    %c0_17 = arith.constant 0 : index
    %c0_18 = arith.constant 0 : index
    %33 = vector.load %arg6[%c0_17, %c0_18] : memref<1x256xf32, #tpu.memory_space<vmem>>, vector<1x256xf32>
    tpu.vector_store %arg6[%c0_17, %c0_18], %32 {strides = array<i32>} : memref<1x256xf32, #tpu.memory_space<vmem>>, vector<1x256xf32>,
    return
  }
  func.func @transform_0(%arg0: i32) -> (i32, i32) {
    %c0_i32 = arith.constant 0 : i32
    %c0_i32_0 = arith.constant 0 : i32
    return %c0_i32, %arg0 : i32, i32
  }
  func.func @transform_1(%arg0: i32) -> (i32, i32) {
    %c0_i32 = arith.constant 0 : i32
    %c0_i32_0 = arith.constant 0 : i32
    %c0_i32_1 = arith.constant 0 : i32
    return %c0_i32, %c0_i32_0 : i32, i32
  }
  func.func @transform_2(%arg0: i32) -> (i32, i32) {
    %c0_i32 = arith.constant 0 : i32
    %c0_i32_0 = arith.constant 0 : i32
    %c0_i32_1 = arith.constant 0 : i32
    return %c0_i32, %c0_i32_0 : i32, i32
  }
  func.func @transform_3(%arg0: i32) -> (i32, i32, i32) {
    %c0_i32 = arith.constant 0 : i32
    %c0_i32_0 = arith.constant 0 : i32
    %c0_i32_1 = arith.constant 0 : i32
    %c0_i32_2 = arith.constant 0 : i32
    return %c0_i32, %c0_i32_0, %c0_i32_1 : i32, i32, i32
  }
  func.func @transform_4(%arg0: i32) -> (i32, i32, i32) {
    %c0_i32 = arith.constant 0 : i32
    %c0_i32_0 = arith.constant 0 : i32
    %c0_i32_1 = arith.constant 0 : i32
    %c0_i32_2 = arith.constant 0 : i32
    return %c0_i32, %c0_i32_0, %c0_i32_1 : i32, i32, i32
  }
  func.func @transform_5(%arg0: i32) -> (i32, i32) {
    %c0_i32 = arith.constant 0 : i32
    %c0_i32_0 = arith.constant 0 : i32
    return %c0_i32, %arg0 : i32, i32
  }
}

</mosaic_0001>

<bundles_post_ra>
// kernel: tpu_custom_call.1
= control target key start
LH: loop header
LB: loop body
LE: loop exit
PB: predicated region body
PF: predicated region fallthrough
CT: control target
= control target key end

     0   :  { %v561_v2 = vmov 0   ;;  %s699_s0 = inlined_call_operand.vmem [shape: f32[2,256], index: 0, kind: input, shape index: {}]   ;;  %s700_s1 = inlined_call_operand.vmem [shape: f32[32,2], index: 1, kind: input, shape index: {}]   ;;  %s701_s2 = inlined_call_operand.vmem [shape: f32[32,1], index: 2, kind: input, shape index: {}]   ;;  %s702_s3 = inlined_call_operand.vmem [shape: f32[2,32,32], index: 3, kind: input, shape index: {}]   ;;  %s703_s4 = inlined_call_operand.vmem [shape: f32[2,32,1], index: 4, kind: input, shape index: {}]   ;;  %s704_s5 = inlined_call_operand.hbm [shape: f32[1,256], index: 5, kind: output, shape index: {}]  }
   0x1   :  { %v26_v0 = vld [vmem:[%s701_s2] sm:$0xff]  ;;  %498 = vset.pattern.permute.xlu1 %v561_v2  ;;  %497 = vset.pattern.permute.xlu0 %v561_v2  ;;  %v27_v3 = vld [vmem:[%s701_s2 + $0x8] sm:$0xff] }
   0x2   :  { %v22_v1 = vld [vmem:[%s700_s1] sm:$0xff]  ;;  %79 = vperm.xlu1 %498, %v26_v0   ;;  %v23_v4 = vld [vmem:[%s700_s1 + $0x8] sm:$0xff] }
   0x3   :  { %32 = vperm.xlu0 %497, %v22_v1  }
   0x4   :  { %10 = vsyncpa [#allocation3], 0  ;;  %v25_v5 = vld [vmem:[%s700_s1 + $0x18] sm:$0xff]  ;;  %v562_v6 = vmov 1   ;;  %v24_v7 = vld [vmem:[%s700_s1 + $0x10] sm:$0xff]  ;;  %v563_v10 = vmov 0.0   ;;  %v51_v16 = vlaneseq }
   0x5   :  { %v28_v8 = vld [vmem:[%s701_s2 + $0x10] sm:$0xff]  ;;  %v29_v9 = vld [vmem:[%s701_s2 + $0x18] sm:$0xff]  ;;  %268 = vmatprep.mubr.f32.mxu0 %v563_v10  ;;  %404 = vmatprep.mubr.f32.mxu1 %v563_v10  ;;  %v167_v11 = vld [vmem:[%s703_s4] sm:$0xff]  ;;  %vm191_vm0 = vcmask 261120   ;;  %s565_s8 = smov [#allocation2]  }
   0x6   :  { %84 = vperm.xlu1 %498, %v27_v3   ;;  %v168_v12 = vld [vmem:[%s703_s4 + $0x8] sm:$0xff]  ;;  %v169_v13 = vld [vmem:[%s703_s4 + $0x10] sm:$0xff]  ;;  %v468_v14 = vld [vmem:[%s703_s4 + $0x20] sm:$0xff]  ;;  %v638_v17 = vshrl.u32 %v51_v16, 7  ;;  %s452_s1 = sshll.u32 %s565_s8, 4  ;;  %vm443_vm1 = vcmp.lt.s32.totalorder %v51_v16, 256  ;;  %s453_s1 = int_to_ptr.vmem [resolvable:$true] %s452_s1 }
   0x7   :  { %37 = vperm.xlu0 %497, %v23_v4   ;;  %v170_v15 = vld [vmem:[%s703_s4 + $0x18] sm:$0xff]  ;;  %v21_v20 = vld [vmem:[%s699_s0] sm:$0xf]  ;;  %p542_p1 = scmp.lt.s32.totalorder %s453_s1, %s453_s1 }
   0x8   :  { %v53_v18 = vsub.s32 0, %v638_v17  ;;  %v57_v19 = vsub.s32 2, %v638_v17  ;;  %v123_v21 = vsub.s32 1, %v638_v17  ;;  %v127_v22 = vsub.s32 3, %v638_v17 }
   0xa   :  { %499 = vset.pattern.permute.xlu1 %v562_v6  ;;  %v54_v25 = vrot.slane %v21_v20, %v53_v18  ;;  %v58_v26 = vrot.slane %v21_v20, %v57_v19  ;;  %v124_v27 = vrot.slane %v21_v20, %v123_v21  ;;  %v128_v28 = vrot.slane %v21_v20, %v127_v22 }
   0xb   :  { %47 = vperm.xlu0 %497, %v25_v5   ;;  %110 = vperm.xlu1 %499, %v23_v4  }
   0xc   :  { %v64_v29 = vrot.slane %v54_v25, %v53_v18  ;;  %v68_v32 = vrot.slane %v58_v26, %v53_v18  ;;  %v134_v34 = vrot.slane %v124_v27, %v123_v21  ;;  %v138_v35 = vrot.slane %v128_v28, %v123_v21  ;;  %v163_v26 = vld [vmem:[%s702_s3] sm:$0xff]  ;;  %v164_v27 = vld [vmem:[%s702_s3 + $0x8] sm:$0xff]  ;;  %v165_v28 = vld [vmem:[%s702_s3 + $0x10] sm:$0xff] }
   0xf   :  { %501 = vset.pattern.permute.xlu0 %v562_v6  ;;  %500 = vset.pattern.permute.xlu1 %v561_v2 }
  0x10   :  { %106 = vperm.xlu0 %501, %v22_v1   ;;  %42 = vperm.xlu1 %500, %v24_v7  }
  0x14   :  { %114 = vperm.xlu0 %501, %v24_v7   ;;  %89 = vperm.xlu1 %500, %v28_v8  }
  0x18   :  { %504 = vset.pattern.permute.xlu0 %v561_v2  ;;  %94 = vperm.xlu1 %500, %v29_v9  }
  0x19   :  { %178 = vperm.xlu0 %504, %v168_v12  }
  0x1c   :  { %502 = vset.pattern.permute.xlu1 %v562_v6 }
  0x1d   :  { %118 = vperm.xlu1 %502, %v25_v5   ;;  %313 = vperm.xlu0 %504, %v468_v14  }
  0x21   :  { %503 = vset.pattern.permute.xlu1 %v561_v2 }
  0x22   :  { %173 = vperm.xlu1 %503, %v167_v11  }
  0x26   :  { %183 = vperm.xlu1 %503, %v169_v13  }
  0x2a   :  { %188 = vperm.xlu1 %503, %v170_v15  }
  0x81   :  { %v80_v23 = vpop.permute.xlu1 %79 }
  0x82   :  { %v33_v24 = vpop.permute.xlu0 %32 }
  0x83   :  { %v69_v38 = vmul.f32 %v64_v29, %v33_v24  ;;  %v70_v40 = vmul.f32 %v68_v32, %v33_v24 }
  0x85   :  { %v85_v30 = vpop.permute.xlu1 %84  ;;  %v97_v48 = vadd.f32 %v80_v23, %v69_v38  ;;  %v98_v49 = vadd.f32 %v80_v23, %v70_v40 }
  0x86   :  { %v38_v31 = vpop.permute.xlu0 %37 }
  0x87   :  { %v71_v33 = vmul.f32 %v64_v29, %v38_v31  ;;  %v72_v36 = vmul.f32 %v68_v32, %v38_v31 }
  0x89   :  { %v99_v41 = vadd.f32 %v85_v30, %v71_v33  ;;  %v100_v44 = vadd.f32 %v85_v30, %v72_v36 }
  0x8a   :  { %v48_v37 = vpop.permute.xlu0 %47  ;;  %v111_v39 = vpop.permute.xlu1 %110 }
  0x8b   :  { %v141_v42 = vmul.f32 %v134_v34, %v111_v39  ;;  %v142_v43 = vmul.f32 %v138_v35, %v111_v39  ;;  %v75_v1 = vmul.f32 %v64_v29, %v48_v37  ;;  %v76_v2 = vmul.f32 %v68_v32, %v48_v37 }
  0x8d   :  { %v149_v45 = vadd.f32 %v141_v42, %v99_v41  ;;  %v150_v46 = vadd.f32 %v142_v43, %v100_v44 }
  0x8f   :  { %v107_v47 = vpop.permute.xlu0 %106  ;;  %v43_v52 = vpop.permute.xlu1 %42  ;;  %505 = vtanh.f32 %v149_v45 }
  0x90   :  { %v139_v50 = vmul.f32 %v134_v34, %v107_v47  ;;  %v140_v51 = vmul.f32 %v138_v35, %v107_v47  ;;  %507 = vtanh.f32 %v150_v46  ;;  %v73_v57 = vmul.f32 %v64_v29, %v43_v52  ;;  %v166_v29 = vld [vmem:[%s702_s3 + $0x18] sm:$0xff] }
  0x91   :  { %v74_v58 = vmul.f32 %v68_v32, %v43_v52 }
  0x92   :  { %v147_v53 = vadd.f32 %v139_v50, %v97_v48  ;;  %v148_v54 = vadd.f32 %v140_v51, %v98_v49 }
  0x93   :  { %v90_v55 = vpop.permute.xlu1 %89  ;;  %v115_v56 = vpop.permute.xlu0 %114 }
  0x94   :  { %509 = vtanh.f32 %v147_v53  ;;  %v101_v59 = vadd.f32 %v90_v55, %v73_v57  ;;  %v143_v60 = vmul.f32 %v134_v34, %v115_v56  ;;  %v102_v62 = vadd.f32 %v90_v55, %v74_v58 }
  0x95   :  { %511 = vtanh.f32 %v148_v54  ;;  %v144_v63 = vmul.f32 %v138_v35, %v115_v56 }
  0x96   :  { %v151_v3 = vadd.f32 %v143_v60, %v101_v59 }
  0x97   :  { %v95_v61 = vpop.permute.xlu1 %94  ;;  %v152_v5 = vadd.f32 %v144_v63, %v102_v62  ;;  %v464_v62 = vld [vmem:[%s702_s3 + $0x20] sm:$0xff]  ;;  %v465_v63 = vld [vmem:[%s702_s3 + $0x28] sm:$0xff] }
  0x98   :  { %v103_v8 = vadd.f32 %v95_v61, %v75_v1  ;;  %v104_v9 = vadd.f32 %v95_v61, %v76_v2  ;;  %513 = vtanh.f32 %v151_v3  ;;  %v467_v1 = vld [vmem:[%s702_s3 + $0x38] sm:$0xff]  ;;  %v564_v2 = vmov 1966171168  }
  0x99   :  { %v506_v0 = vpop.eup %505  ;;  %515 = vtanh.f32 %v152_v5  ;;  %v427_v3 = vunpack.c.l.s4 %v564_v2 }
  0x9a   :  { %v508_v4 = vpop.eup %507 }
  0x9c   :  { %v119_v6 = vpop.permute.xlu1 %118 }
  0x9d   :  { %v145_v11 = vmul.f32 %v134_v34, %v119_v6  ;;  %v146_v12 = vmul.f32 %v138_v35, %v119_v6  ;;  %v179_v35 = vpop.permute.xlu0 %178 }
  0x9e   :  { %v510_v7 = vpop.eup %509 }
  0x9f   :  { %v512_v13 = vpop.eup %511  ;;  %v478_v14 = vpack.c.bf16 %v506_v0, %v510_v7  ;;  %v153_v15 = vadd.f32 %v145_v11, %v103_v8  ;;  %v154_v18 = vadd.f32 %v146_v12, %v104_v9  ;;  %v466_v0 = vld [vmem:[%s702_s3 + $0x30] sm:$0xff]  ;;  %s537_s3 = scalar_lea.vmem %s453_s1, 32 }
  0xa0   :  { %v476_v19 = vpack.c.bf16 %v508_v4, %v512_v13  ;;  %v428_v4 = vunpack.c.0.s8 %v427_v3  ;;  %p538_p0 = scmp.ne.s32.totalorder %s453_s1, %s537_s3  ;;  %p543_p2 = scmp.lt.s32.totalorder %s537_s3, %s537_s3 }
  0xa1   :  { %517 = vtanh.f32 %v153_v15  ;;  %v174_v30 = vpop.permute.xlu1 %173  ;;  %v314_v5 = vpop.permute.xlu0 %313 }
  0xa2   :  { %477 = vmatprep.subr.bf16.mxu0 %v476_v19  ;;  %519 = vtanh.f32 %v154_v18  ;;  %v514_v20 = vpop.eup %513  ;;  %v431_v11 = vsub.s32 %v428_v4, %v638_v17  ;;  %p544_p3 = por %p543_p2, %p542_p1 }
  0xa3   :  { %479 = vmatpush1.bf16.msra.mxu0 %v478_v14  ;;  %v516_v21 = vpop.eup %515 }
  0xa4   :  { %p545_p4 = pnand %p544_p3, %p538_p0 }
  0xa5   :  { %v184_v39 = vpop.permute.xlu1 %183 }
  0xa9   :  { %v189_v45 = vpop.permute.xlu1 %188 }
  0xab   :  { %v518_v22 = vpop.eup %517 }
  0xac   :  { %v520_v23 = vpop.eup %519  ;;  %v482_v24 = vpack.c.bf16 %v518_v22, %v514_v20 }
  0xad   :  { %v480_v25 = vpack.c.bf16 %v520_v23, %v516_v21 }
  0xaf   :  { %481 = vmatprep.subr.bf16.mxu0 %v480_v25 }
  0xb0   :  { %483 = vmatpush1.bf16.msra.mxu0 %v482_v24 }
  0xb3   :  { %460 = vmatmul.mubr.msk.f32.vlgmr.msra.gmra.mrb[0].mxu0 %vm191_vm0, %v163_v26 }
  0xb4   :  { %274 = vmatprep.mubr.f32.mxu0 %v563_v10 }
  0xb7   :  { %461 = vmatmul.mubr.msk.f32.gmra.mrb[2].mxu0 %vm191_vm0, %v164_v27 }
  0xb8   :  { %280 = vmatprep.mubr.f32.mxu0 %v563_v10 }
  0xbb   :  { %462 = vmatmul.mubr.msk.f32.gmra.mrb[4].mxu0 %vm191_vm0, %v165_v28 }
  0xbc   :  { %286 = vmatprep.mubr.f32.mxu0 %v563_v10 }
  0xbf   :  { %463 = vmatmul.mubr.msk.f32.gmra.mrb[6].mxu0 %vm191_vm0, %v166_v29 }
 0x186   :  { %v270_v31 = vpop.f32.mrb[0].mxu0 }
 0x187   :  { %v271_v32 = vadd.f32 %v270_v31, %v174_v30  ;;  %v272_v33 = vpop.f32.mrb[1].mxu0 }
 0x188   :  { %v273_v34 = vadd.f32 %v272_v33, %v174_v30 }
 0x189   :  { %521 = vtanh.f32 %v271_v32 }
 0x18a   :  { %v276_v36 = vpop.f32.mrb[2].mxu0  ;;  %523 = vtanh.f32 %v273_v34 }
 0x18b   :  { %v277_v37 = vadd.f32 %v276_v36, %v179_v35  ;;  %v278_v38 = vpop.f32.mrb[3].mxu0 }
 0x18c   :  { %v279_v40 = vadd.f32 %v278_v38, %v179_v35 }
 0x18d   :  { %525 = vtanh.f32 %v277_v37 }
 0x18e   :  { %527 = vtanh.f32 %v279_v40  ;;  %v282_v41 = vpop.f32.mrb[4].mxu0 }
 0x18f   :  { %v283_v42 = vadd.f32 %v282_v41, %v184_v39  ;;  %v284_v43 = vpop.f32.mrb[5].mxu0 }
 0x190   :  { %v285_v44 = vadd.f32 %v284_v43, %v184_v39 }
 0x191   :  { %529 = vtanh.f32 %v283_v42 }
 0x192   :  { %v288_v46 = vpop.f32.mrb[6].mxu0  ;;  %531 = vtanh.f32 %v285_v44 }
 0x193   :  { %v289_v47 = vadd.f32 %v288_v46, %v189_v45  ;;  %v290_v48 = vpop.f32.mrb[7].mxu0  ;;  %v522_v50 = vpop.eup %521 }
 0x194   :  { %v291_v49 = vadd.f32 %v290_v48, %v189_v45  ;;  %v524_v51 = vpop.eup %523 }
 0x195   :  { %533 = vtanh.f32 %v289_v47 }
 0x196   :  { %535 = vtanh.f32 %v291_v49 }
 0x197   :  { %v526_v52 = vpop.eup %525 }
 0x198   :  { %v528_v53 = vpop.eup %527  ;;  %v486_v54 = vpack.c.bf16 %v526_v52, %v522_v50 }
 0x199   :  { %v484_v55 = vpack.c.bf16 %v528_v53, %v524_v51 }
 0x19b   :  { %485 = vmatprep.subr.bf16.mxu1 %v484_v55  ;;  %v530_v56 = vpop.eup %529 }
 0x19c   :  { %487 = vmatpush1.bf16.msra.mxu1 %v486_v54  ;;  %v532_v57 = vpop.eup %531 }
 0x19f   :  { %v534_v58 = vpop.eup %533 }
 0x1a0   :  { %v536_v59 = vpop.eup %535  ;;  %v490_v60 = vpack.c.bf16 %v534_v58, %v530_v56 }
 0x1a1   :  { %v488_v61 = vpack.c.bf16 %v536_v59, %v532_v57 }
 0x1a3   :  { %489 = vmatprep.subr.bf16.mxu1 %v488_v61 }
 0x1a4   :  { %491 = vmatpush1.bf16.msra.mxu1 %v490_v60 }
 0x1a7   :  { %472 = vmatmul.mubr.msk.f32.vlgmr.msra.gmra.mrb[0].mxu1 %vm191_vm0, %v464_v62 }
 0x1a8   :  { %410 = vmatprep.mubr.f32.mxu1 %v563_v10 }
 0x1ab   :  { %473 = vmatmul.mubr.msk.f32.gmra.mrb[2].mxu1 %vm191_vm0, %v465_v63 }
 0x1ac   :  { %414 = vmatprep.mubr.f32.mxu1 %v563_v10 }
 0x1af   :  { %474 = vmatmul.mubr.msk.f32.gmra.mrb[4].mxu1 %vm191_vm0, %v466_v0 }
 0x1b0   :  { %418 = vmatprep.mubr.f32.mxu1 %v563_v10 }
 0x1b3   :  { %475 = vmatmul.mubr.msk.f32.gmra.mrb[6].mxu1 %vm191_vm0, %v467_v1 }
 0x27a   :  { %v406_v6 = vpop.f32.mrb[0].mxu1 }
 0x27b   :  { %v407_v7 = vadd.f32 %v406_v6, %v314_v5  ;;  %v408_v8 = vpop.f32.mrb[1].mxu1 }
 0x27c   :  { %v409_v9 = vadd.f32 %v408_v8, %v314_v5 }
 0x27e   :  { %v425_v12 = vcombine.low %v407_v7, %v409_v9  ;;  %v412_v13 = vpop.f32.mrb[2].mxu1 }
 0x27f   :  { %v413_v14 = vpop.f32.mrb[3].mxu1 }
 0x280   :  { %v432_v10 = vrot.slane %v425_v12, %v431_v11 }
 0x282   :  { %v416_v15 = vpop.f32.mrb[4].mxu1  ;;  %v439_v18 = vrot.slane %v432_v10, %v431_v11 }
 0x283   :  { %v417_v19 = vpop.f32.mrb[5].mxu1 }
 0x284   :  { %445 = vst.msk [vmem:[#allocation2] sm:$0x3] %vm443_vm1, %v439_v18 }
 0x285   :  { %548 = shalt.err (!%p545_p4)
}
 0x286   :  { %s549_s11 = scalar_lea.hbm %s704_s5, 32 }
 0x287   :  { %p550_p5 = scmp.ne.s32.totalorder %s704_s5, %s549_s11  ;;  %p553_p6 = scmp.lt.u32.totalorder %s549_s11, %s704_s5 }
 0x289   :  { %p555_p7 = pnand %p553_p6, %p550_p5 }
 0x28b   :  { %558 = shalt.err (!%p555_p7)
}
 0x28c   :  { %455 = dma.vmem_to_hbm [thread:$0]  %s453_s1, 32, %s704_s5, [#allocation3]   ;;  %v420_v16 = vpop.f32.mrb[6].mxu1 }
 0x28d   :  { %v421_v17 = vpop.f32.mrb[7].mxu1 }
 0x28e   :  { %559 = dma.done.wait [#allocation3], 32  }
 0x28f   :  { %560 = vsyncadd [#allocation3], 4294967264 }
 0x290   :  { %459 = vsyncpa [#allocation3], 1 }

</bundles_post_ra>
